<compile_context>
chip_gen: v6e
topology: v6e:2x2x1
jax: 0.10.0
libtpu: 0.0.40
codegen_flags: <defaults>
</compile_context>

<pallas_src>
import numpy as np
import jax
import jax.numpy as jnp
from jax.experimental import pallas as pl
from jax.experimental.pallas import tpu as pltpu

LN_EPS = 1e-5
BN_EPS = 1e-5


# ------------------------------ fused Pallas kernel ------------------------------ #

def make_fused_kernel(ndom, ntask, exp_dims, s2):
    """Kernel closure. exp_dims = [in, d1, ..., F] for each MI expert (mean path)."""
    n_exp = 1 + ndom + ntask           # shared expert (expert_num == 1) + domain + task
    n_layers = len(exp_dims) - 1

    def seg_ln(y, A, g, be):
        # segment LayerNorm via a constant block-averaging matrix A (rides the MXU
        # instead of sub-128-lane XLU reductions + slice/concat).
        mu = jnp.dot(y, A, preferred_element_type=jnp.float32)
        yc = y - mu
        var = jnp.dot(yc * yc, A, preferred_element_type=jnp.float32)
        return yc * jax.lax.rsqrt(var + LN_EPS) * g + be

    def bdot(a, w):
        # weight matmul: bf16 inputs, f32 accumulate.
        return jnp.dot(a.astype(jnp.bfloat16), w, preferred_element_type=jnp.float32)

    def kernel(dom_ref, x_ref, w1_ref, b1p_ref, aff1_ref, lnavg_ref, smlpw_ref, *rest):
        exp_refs = rest[:3 * n_layers]
        tw1_ref, tb1_ref, tw2_ref, t2p_ref, sel_ref, o_ref = rest[3 * n_layers:]

        dom_f = dom_ref[...].astype(jnp.float32)          # (bt, 1)
        x = x_ref[...]                                    # (bt, D_in) f32

        b1p = b1p_ref[...]                                # (2, S2 + D*S1): [bias; col->dom]
        aff = aff1_ref[...]                               # (5, S2): skip_g, skip_be, smlp_b, smlp_g, smlp_be
        A_s = lnavg_ref[...]                              # (S2, S2) full 1/S2

        # stage A: ONE wide matmul for skip_conn + STAR (all domains).
        fused = bdot(x, w1_ref[...]) + b1p[0:1, :]        # (bt, S2 + D*S1)

        # skip_conn = Linear -> LayerNorm -> ReLU (columns [0, S2))
        skip = jnp.maximum(seg_ln(fused[:, :s2], A_s, aff[0:1, :], aff[1:2, :]), 0.0)

        # STAR domain selection folded into the star_mlp matmul: mask columns whose
        # domain id matches this row, then multiply by the domain-replicated smlp weight.
        star_mask = (b1p[1:2, :] == dom_f).astype(jnp.float32)       # (bt, S2 + D*S1)
        smlp_pre = bdot(fused * star_mask, smlpw_ref[...]) + aff[2:3, :]
        emb = jnp.maximum(seg_ln(smlp_pre, A_s, aff[3:4, :], aff[4:5, :]), 0.0) + skip

        # MI experts (eval mode => output == mean path), all 1+D+T experts batched into
        # one wide matmul per layer, per-expert LayerNorm as a segment-LN.
        # TODO(synk): cov path / gaussian reparameterization noise / kld & orth losses are
        # training-only side outputs and do not affect the returned result.
        h = emb
        for l in range(n_layers):
            wr, pr, ar = exp_refs[3 * l:3 * l + 3]
            p = pr[...]                                   # (3, n_exp*dout): [b; g; be]
            y = bdot(h, wr[...]) + p[0:1, :]
            h = jnp.maximum(seg_ln(y, ar[...], p[1:2, :], p[2:3, :]), 0.0)

        # towers: concat(shared, domain_i%D, task_i%T) fused via block-structured tw1
        # (eval BatchNorm pre-folded); block-diagonal tw2 -> lane-dense (bt, D*T) logits.
        t1 = jnp.maximum(bdot(h, tw1_ref[...]) + tb1_ref[...], 0.0)
        t2p = t2p_ref[...]                                # (2, D*T): [tb2; col->dom]
        probs = jax.nn.sigmoid(bdot(t1, tw2_ref[...]) + t2p[0:1, :])

        # final per-(task, domain) selection: mask-multiply + constant summation matmul
        # (result[:, t] = probs[:, t*D + d] where domain == d).
        mask2 = (t2p[1:2, :] == dom_f).astype(jnp.float32)
        o_ref[...] = jnp.dot(probs * mask2, sel_ref[...],
                             preferred_element_type=jnp.float32)

    return kernel


def _pick_batch_tile(B):
    # batch tile: multiple of 8; >= 2 grid steps whenever B >= 16 (keeps both v7x
    # TensorCores busy); capped at 1024 rows (activations stay well inside VMEM).
    if B < 16:
        return ((B + 7) // 8) * 8
    return min(1024, (((B + 1) // 2 + 7) // 8) * 8)


def fused_forward(fp, input_emb, domain_id):
    B, d_in = input_emb.shape
    ndom, ntask = fp["ndom"], fp["ntask"]
    bt = _pick_batch_tile(B)
    nsteps = -(-B // bt)
    Bp = nsteps * bt
    if Bp != B:
        input_emb = jnp.pad(input_emb, ((0, Bp - B), (0, 0)))
        domain_id = jnp.pad(domain_id, ((0, Bp - B), (0, 0)))

    weights = [fp["w1"], fp["b1_pack"], fp["aff1"], fp["ln_avg_s"], fp["smlp_w"]]
    for layer in fp["exp"]:
        weights += list(layer)
    weights += [fp["tw1"], fp["tb1"], fp["tw2"], fp["t2_pack"], fp["sel"]]

    kernel = make_fused_kernel(ndom, ntask, fp["exp_dims"], fp["s2"])

    row_spec = lambda n: pl.BlockSpec((bt, n), lambda i: (i, 0))
    full_spec = lambda a: pl.BlockSpec(a.shape, lambda i: (0, 0))

    out = pl.pallas_call(
        kernel,
        out_shape=jax.ShapeDtypeStruct((Bp, ntask), jnp.float32),
        grid=(nsteps,),
        in_specs=[row_spec(1), row_spec(d_in)] + [full_spec(w) for w in weights],
        out_specs=row_spec(ntask),
        compiler_params=pltpu.CompilerParams(
            dimension_semantics=("parallel",),
            vmem_limit_bytes=32 * 1024 * 1024),
    )(domain_id, input_emb, *weights)
    return out[:B]


# --------------------------- parameter construction ------------------------------ #

def glorot(key, fan_in, fan_out):
    lim = (6.0 / (fan_in + fan_out)) ** 0.5
    return jax.random.uniform(key, (fan_in, fan_out), jnp.float32, -lim, lim)


def linear_ln_params(key, din, dout):
    kw, kb, kg, kbe = jax.random.split(key, 4)
    w = glorot(kw, din, dout)
    b = 0.01 * jax.random.normal(kb, (dout,), jnp.float32)
    gamma = jnp.ones((dout,), jnp.float32) + 0.05 * jax.random.normal(kg, (dout,), jnp.float32)
    beta = 0.01 * jax.random.normal(kbe, (dout,), jnp.float32)
    return (w, b, gamma, beta)


def init_params(key, input_dim, fcn_dims, domain_num, task_num):
    fcn_dim = [input_dim] + list(fcn_dims)
    assert len(fcn_dim) > 3, "too few layers assigned"
    star_dim = fcn_dim[:3]
    expert_dims = fcn_dim[3:]
    assert star_dim[2] == expert_dims[0], "star output dim must equal expert input dim"
    F = expert_dims[-1]

    keys = iter(jax.random.split(key, 64))
    params = {}
    params["skip"] = linear_ln_params(next(keys), star_dim[0], star_dim[2])
    params["shared_w"] = glorot(next(keys), star_dim[0], star_dim[1])
    params["shared_b"] = jnp.zeros((star_dim[1],), jnp.float32)
    params["slot_w"] = jnp.stack([glorot(next(keys), star_dim[0], star_dim[1])
                                  for _ in range(domain_num)])
    params["slot_b"] = jnp.zeros((domain_num, star_dim[1]), jnp.float32)
    params["star_mlp"] = linear_ln_params(next(keys), star_dim[1], star_dim[2])

    def expert_params(k):      # MI_Expert mean path (eval-mode output == mean)
        ks = jax.random.split(k, max(1, len(expert_dims) - 1))
        return [linear_ln_params(ks[i], expert_dims[i], expert_dims[i + 1])
                for i in range(len(expert_dims) - 1)]

    params["expert"] = [expert_params(next(keys))]                   # expert_num == 1
    params["domain_expert"] = [expert_params(next(keys)) for _ in range(domain_num)]
    params["task_expert"] = [expert_params(next(keys)) for _ in range(task_num)]

    towers = []
    for _ in range(domain_num * task_num):
        kw1, kb1, kw2, kb2 = jax.random.split(next(keys), 4)
        towers.append((glorot(kw1, 3 * F, F),
                       0.01 * jax.random.normal(kb1, (F,), jnp.float32),
                       jnp.ones((F,), jnp.float32),     # BN gamma
                       jnp.zeros((F,), jnp.float32),    # BN beta
                       jnp.zeros((F,), jnp.float32),    # BN running_mean
                       jnp.ones((F,), jnp.float32),     # BN running_var
                       glorot(kw2, F, 1),
                       0.01 * jax.random.normal(kb2, (1,), jnp.float32)))
    params["tower"] = towers
    return params


def prepare_fused_params(params, domain_num, task_num, star_dim, expert_dims):
    """One-time folding: skip/STAR concat, domain-folded star_mlp weight, concatenated
    expert weights + segment-averaging matrices, eval-BN folded tower W1, block tower
    mats, final-selection constants.  Weight matmuls cast to bf16; structure stays f32."""
    D, T = domain_num, task_num
    n_exp = 1 + D + T
    F = expert_dims[-1]
    nT = D * T
    n_layers = len(expert_dims) - 1
    s0, s1, s2 = star_dim

    fp = {"ndom": D, "ntask": T, "exp_dims": tuple(expert_dims), "s1": s1, "s2": s2}

    # stage A: fused [skip | star_d0 .. star_d(D-1)] weight / bias / column->domain map
    skip_w, skip_b, skip_g, skip_be = params["skip"]
    star_w = jnp.concatenate([params["slot_w"][d] * params["shared_w"] for d in range(D)],
                             axis=1)                                   # (s0, D*s1)
    star_b = jnp.concatenate([params["slot_b"][d] + params["shared_b"] for d in range(D)])
    w1 = jnp.concatenate([skip_w, star_w], axis=1)                     # (s0, s2 + D*s1)
    b1 = jnp.concatenate([skip_b, star_b])
    w1tot = s2 + D * s1
    star_dmap = np.full((w1tot,), -1.0, np.float32)                    # skip cols never match
    for d in range(D):
        star_dmap[s2 + d * s1: s2 + (d + 1) * s1] = float(d)
    fp["w1"] = w1.astype(jnp.bfloat16)
    fp["b1_pack"] = jnp.stack([b1, jnp.asarray(star_dmap)])            # (2, w1tot) f32

    # star_mlp weight replicated per domain (domain selection happens via the mask)
    smlp_w, smlp_b, smlp_g, smlp_be = params["star_mlp"]
    fp["smlp_w"] = jnp.concatenate(
        [jnp.zeros((s2, s2), jnp.float32)] + [smlp_w] * D, axis=0).astype(jnp.bfloat16)
    fp["aff1"] = jnp.stack([skip_g, skip_be, smlp_b, smlp_g, smlp_be])  # (5, s2)
    fp["ln_avg_s"] = jnp.full((s2, s2), 1.0 / s2, jnp.float32)

    # experts, order [shared, domain_0..D-1, task_0..T-1]
    # TODO(synk): gate is the identity for expert_num == 1 (softmax over one logit).
    experts = [params["expert"][0]] + list(params["domain_expert"]) + list(params["task_expert"])
    exp_layers = []
    for l in range(n_layers):
        din, dout = expert_dims[l], expert_dims[l + 1]
        if l == 0:   # shared input -> concatenate along output columns
            W = jnp.concatenate([experts[e][l][0] for e in range(n_exp)], axis=1)
        else:        # per-expert inputs -> block-diagonal
            W = jnp.zeros((n_exp * din, n_exp * dout), jnp.float32)
            for e in range(n_exp):
                W = W.at[e * din:(e + 1) * din, e * dout:(e + 1) * dout].set(experts[e][l][0])
        b_ = jnp.concatenate([experts[e][l][1] for e in range(n_exp)])
        g_ = jnp.concatenate([experts[e][l][2] for e in range(n_exp)])
        be_ = jnp.concatenate([experts[e][l][3] for e in range(n_exp)])
        A = jnp.asarray(np.kron(np.eye(n_exp, dtype=np.float32),
                                np.full((dout, dout), 1.0 / dout, np.float32)))
        exp_layers.append((W.astype(jnp.bfloat16), jnp.stack([b_, g_, be_]), A))
    fp["exp"] = exp_layers

    # towers: fold eval BN into W1/b1; fuse concat(shared, domain_i%D, task_i%T) by
    # placing the three (F,F) row-blocks of each tower's W1 at the matching rows of h.
    W1_big = np.zeros((n_exp * F, nT * F), np.float32)
    W2_big = np.zeros((nT * F, nT), np.float32)
    b1_parts, b2_parts = [], []
    for i in range(nT):
        w1t, b1t, g, be, rm, rv, w2t, b2t = params["tower"][i]
        inv = g / jnp.sqrt(rv + BN_EPS)
        w1f = np.asarray(w1t * inv[None, :])
        b1f = (b1t - rm) * inv + be
        d, t = i % D, i % T
        cs = slice(i * F, (i + 1) * F)
        W1_big[0:F, cs] = w1f[0:F]                                     # shared rows
        W1_big[(1 + d) * F:(2 + d) * F, cs] = w1f[F:2 * F]             # domain rows
        W1_big[(1 + D + t) * F:(2 + D + t) * F, cs] = w1f[2 * F:3 * F]  # task rows
        W2_big[i * F:(i + 1) * F, i] = np.asarray(w2t)[:, 0]
        b1_parts.append(b1f)
        b2_parts.append(b2t)
    fp["tw1"] = jnp.asarray(W1_big).astype(jnp.bfloat16)
    fp["tb1"] = jnp.concatenate(b1_parts).reshape(1, -1)
    fp["tw2"] = jnp.asarray(W2_big).astype(jnp.bfloat16)
    tb2 = jnp.concatenate(b2_parts)                                    # (nT,)
    out_dmap = np.array([c % D for c in range(nT)], np.float32)        # column -> domain
    fp["t2_pack"] = jnp.stack([tb2, jnp.asarray(out_dmap)])            # (2, nT)
    sel = np.zeros((nT, T), np.float32)                                # column -> task sum
    for c in range(nT):
        sel[c, c // D] = 1.0
    fp["sel"] = jnp.asarray(sel)
    return fp


# ----------------------------------- forward ------------------------------------- #

def forward(fp, x, emb_tables):
    num_fields, B = x.shape
    domain_id = x[-1, :].astype(jnp.int32).reshape(B, 1)
    # EmbeddingLayer(..., squeeze_dim=True): gather + concat kept in XLA (tiny tables).
    input_emb = jnp.concatenate(
        [emb_tables[f][x[f]] for f in range(num_fields)], axis=-1)   # (B, input_dim)
    return fused_forward(fp, input_emb, domain_id)


# ------------------------- pure-JAX reference (for checking) --------------------- #

def reference_forward(params, x, emb_tables, domain_num, task_num):
    num_fields, B = x.shape
    domain_id = x[-1, :]
    input_emb = jnp.concatenate([emb_tables[f][x[f]] for f in range(num_fields)], axis=-1)

    def mlp(p, h):
        w, b, g, be = p
        y = h @ w + b
        m = jnp.mean(y, -1, keepdims=True)
        v = jnp.mean(jnp.square(y - m), -1, keepdims=True)
        return jnp.maximum((y - m) / jnp.sqrt(v + LN_EPS) * g + be, 0.0)

    skip = mlp(params["skip"], input_emb)
    emb = jnp.zeros((B, params["shared_w"].shape[1]), jnp.float32)
    for d in range(domain_num):
        out_d = (input_emb @ (params["slot_w"][d] * params["shared_w"])
                 + params["slot_b"][d] + params["shared_b"])
        emb = jnp.where((domain_id == d)[:, None], out_d, emb)
    emb = mlp(params["star_mlp"], emb) + skip

    def run_expert(layers, h):
        for layer in layers:
            h = mlp(layer, h)
        return h

    shared_fea = run_expert(params["expert"][0], emb)
    domain_fea = [run_expert(p, emb) for p in params["domain_expert"]]
    task_fea = [run_expert(p, emb) for p in params["task_expert"]]

    outs = []
    for i in range(task_num * domain_num):
        fused = jnp.concatenate(
            [shared_fea, domain_fea[i % domain_num], task_fea[i % task_num]], -1)
        w1, b1, g, be, rm, rv, w2, b2 = params["tower"][i]
        h = fused @ w1 + b1
        h = (h - rm) / jnp.sqrt(rv + BN_EPS) * g + be
        h = jnp.maximum(h, 0.0)
        outs.append(jax.nn.sigmoid(h @ w2 + b2))
    output = jnp.concatenate(outs, axis=1)

    cols = []
    for t in range(task_num):
        col = jnp.zeros((B,), jnp.float32)
        for d in range(domain_num):
            col = jnp.where(domain_id == d, output[:, t * domain_num + d], col)
        cols.append(col)
    return jnp.stack(cols, axis=1)


# ------------------------------------- main --------------------------------------- #

if __name__ == "__main__":
    key = jax.random.PRNGKey(0)
    B = 8
    num_fields = 4
    embed_dim = 8
    vocab = 10
    domain_num, task_num = 3, 2
    input_dim = num_fields * embed_dim              # 32
    fcn_dims = [64, 32, 32, 16]                     # star_dim [32,64,32], expert [32,16]

    k_emb, k_x, k_dom, k_par = jax.random.split(key, 4)
    emb_tables = [0.1 * jax.random.normal(k, (vocab, embed_dim), jnp.float32)
                  for k in jax.random.split(k_emb, num_fields)]

    x = jax.random.randint(k_x, (num_fields, B), 0, vocab, jnp.int32)
    x = x.at[-1, :].set(jax.random.randint(k_dom, (B,), 0, domain_num, jnp.int32))

    params = init_params(k_par, input_dim, fcn_dims, domain_num, task_num)
    fcn_dim = [input_dim] + fcn_dims
    fp = prepare_fused_params(params, domain_num, task_num,
                              star_dim=fcn_dim[:3], expert_dims=fcn_dim[3:])

    result = forward(fp, x, emb_tables)
    result = jax.block_until_ready(result)
    assert result.shape == (B, task_num)
    assert bool(jnp.all(jnp.isfinite(result)))

    ref = reference_forward(params, x, emb_tables, domain_num, task_num)
    # bf16 weight matmuls (f32 accumulate) -> compare to the f32 reference with a
    # tolerance that still catches structural errors (which are O(0.1+)).
    max_err = float(jnp.max(jnp.abs(result - ref)))
    assert bool(jnp.allclose(result, ref, atol=4e-2, rtol=4e-2)), \
        f"mismatch: max abs err {max_err}"

    print("KERNEL_OK")
</pallas_src>

<mosaic_0001>
module attributes {stable_mosaic.version = 11 : i64} {
  func.func @kernel(%arg0: i32, %arg1: memref<8x1xi32, #tpu.memory_space<vmem>>, %arg2: memref<8x32xf32, #tpu.memory_space<vmem>>, %arg3: memref<32x224xbf16, #tpu.memory_space<vmem>>, %arg4: memref<2x224xf32, #tpu.memory_space<vmem>>, %arg5: memref<5x32xf32, #tpu.memory_space<vmem>>, %arg6: memref<32x32xf32, #tpu.memory_space<vmem>>, %arg7: memref<224x32xbf16, #tpu.memory_space<vmem>>, %arg8: memref<32x96xbf16, #tpu.memory_space<vmem>>, %arg9: memref<3x96xf32, #tpu.memory_space<vmem>>, %arg10: memref<96x96xf32, #tpu.memory_space<vmem>>, %arg11: memref<96x96xbf16, #tpu.memory_space<vmem>>, %arg12: memref<1x96xf32, #tpu.memory_space<vmem>>, %arg13: memref<96x6xbf16, #tpu.memory_space<vmem>>, %arg14: memref<2x6xf32, #tpu.memory_space<vmem>>, %arg15: memref<6x2xf32, #tpu.memory_space<vmem>>, %arg16: memref<8x2xf32, #tpu.memory_space<vmem>>) attributes {dimension_semantics = [#tpu.dimension_semantics<parallel>], iteration_bounds = array<i64: 1>, scalar_prefetch = 0 : i64, scratch_operands = 0 : i64, tpu.core_type = #tpu.core_type<tc>, window_params = [{transform_indices = @transform_0, window_bounds = array<i64: 8, 1>}, {transform_indices = @transform_1, window_bounds = array<i64: 8, 32>}, {pipeline_mode = #tpu.pipeline_mode<synchronous>, transform_indices = @transform_2, window_bounds = array<i64: 32, 224>}, {pipeline_mode = #tpu.pipeline_mode<synchronous>, transform_indices = @transform_3, window_bounds = array<i64: 2, 224>}, {pipeline_mode = #tpu.pipeline_mode<synchronous>, transform_indices = @transform_4, window_bounds = array<i64: 5, 32>}, {pipeline_mode = #tpu.pipeline_mode<synchronous>, transform_indices = @transform_5, window_bounds = array<i64: 32, 32>}, {pipeline_mode = #tpu.pipeline_mode<synchronous>, transform_indices = @transform_6, window_bounds = array<i64: 224, 32>}, {pipeline_mode = #tpu.pipeline_mode<synchronous>, transform_indices = @transform_7, window_bounds = array<i64: 32, 96>}, {pipeline_mode = #tpu.pipeline_mode<synchronous>, transform_indices = @transform_8, window_bounds = array<i64: 3, 96>}, {pipeline_mode = #tpu.pipeline_mode<synchronous>, transform_indices = @transform_9, window_bounds = array<i64: 96, 96>}, {pipeline_mode = #tpu.pipeline_mode<synchronous>, transform_indices = @transform_10, window_bounds = array<i64: 96, 96>}, {pipeline_mode = #tpu.pipeline_mode<synchronous>, transform_indices = @transform_11, window_bounds = array<i64: 1, 96>}, {pipeline_mode = #tpu.pipeline_mode<synchronous>, transform_indices = @transform_12, window_bounds = array<i64: 96, 6>}, {pipeline_mode = #tpu.pipeline_mode<synchronous>, transform_indices = @transform_13, window_bounds = array<i64: 2, 6>}, {pipeline_mode = #tpu.pipeline_mode<synchronous>, transform_indices = @transform_14, window_bounds = array<i64: 6, 2>}, {transform_indices = @transform_15, window_bounds = array<i64: 8, 2>}]} {
    %c0 = arith.constant 0 : index
    %c0_0 = arith.constant 0 : index
    %0 = vector.load %arg1[%c0, %c0_0] : memref<8x1xi32, #tpu.memory_space<vmem>>, vector<8x1xi32>
    %1 = arith.sitofp %0 : vector<8x1xi32> to vector<8x1xf32>
    %c0_1 = arith.constant 0 : index
    %c0_2 = arith.constant 0 : index
    %2 = vector.load %arg2[%c0_1, %c0_2] : memref<8x32xf32, #tpu.memory_space<vmem>>, vector<8x32xf32>
    %c0_3 = arith.constant 0 : index
    %c0_4 = arith.constant 0 : index
    %3 = vector.load %arg4[%c0_3, %c0_4] : memref<2x224xf32, #tpu.memory_space<vmem>>, vector<2x224xf32>
    %c0_5 = arith.constant 0 : index
    %c0_6 = arith.constant 0 : index
    %4 = vector.load %arg5[%c0_5, %c0_6] : memref<5x32xf32, #tpu.memory_space<vmem>>, vector<5x32xf32>
    %c0_7 = arith.constant 0 : index
    %c0_8 = arith.constant 0 : index
    %5 = vector.load %arg6[%c0_7, %c0_8] : memref<32x32xf32, #tpu.memory_space<vmem>>, vector<32x32xf32>
    %c0_9 = arith.constant 0 : index
    %c0_10 = arith.constant 0 : index
    %6 = vector.load %arg3[%c0_9, %c0_10] : memref<32x224xbf16, #tpu.memory_space<vmem>>, vector<32x224xbf16>
    %7 = arith.truncf %2 : vector<8x32xf32> to vector<8x32xbf16>
    %cst = arith.constant dense<0.000000e+00> : vector<8x224xf32>
    %8 = tpu.matmul %7, %6, %cst {dimension_numbers = #tpu.dot_dimension_numbers<[1], [0], [0], [1], [0, 0, 1, 1], [], []>} : vector<8x32xbf16>, vector<32x224xbf16>, vector<8x224xf32> -> vector<8x224xf32>
    %9 = vector.extract_strided_slice %3 {offsets = [0, 0], sizes = [1, 224], strides = [1, 1]} : vector<2x224xf32> to vector<1x224xf32>
    %10 = vector.broadcast %9 : vector<1x224xf32> to vector<8x224xf32>
    %11 = arith.addf %8, %10 : vector<8x224xf32>
    %12 = vector.extract_strided_slice %11 {offsets = [0, 0], sizes = [8, 32], strides = [1, 1]} : vector<8x224xf32> to vector<8x32xf32>
    %13 = vector.extract_strided_slice %4 {offsets = [0, 0], sizes = [1, 32], strides = [1, 1]} : vector<5x32xf32> to vector<1x32xf32>
    %14 = vector.extract_strided_slice %4 {offsets = [1, 0], sizes = [1, 32], strides = [1, 1]} : vector<5x32xf32> to vector<1x32xf32>
    %cst_11 = arith.constant dense<0.000000e+00> : vector<8x32xf32>
    %15 = tpu.matmul %12, %5, %cst_11 {dimension_numbers = #tpu.dot_dimension_numbers<[1], [0], [0], [1], [0, 0, 1, 1], [], []>} : vector<8x32xf32>, vector<32x32xf32>, vector<8x32xf32> -> vector<8x32xf32>
    %16 = arith.subf %12, %15 : vector<8x32xf32>
    %17 = arith.mulf %16, %16 : vector<8x32xf32>
    %cst_12 = arith.constant dense<0.000000e+00> : vector<8x32xf32>
    %18 = tpu.matmul %17, %5, %cst_12 {dimension_numbers = #tpu.dot_dimension_numbers<[1], [0], [0], [1], [0, 0, 1, 1], [], []>} : vector<8x32xf32>, vector<32x32xf32>, vector<8x32xf32> -> vector<8x32xf32>
    %cst_13 = arith.constant 9.99999974E-6 : f32
    %19 = vector.broadcast %cst_13 : f32 to vector<8x32xf32>
    %20 = arith.addf %18, %19 : vector<8x32xf32>
    %21 = math.rsqrt %20 : vector<8x32xf32>
    %22 = arith.mulf %16, %21 : vector<8x32xf32>
    %23 = vector.broadcast %13 : vector<1x32xf32> to vector<8x32xf32>
    %24 = arith.mulf %22, %23 : vector<8x32xf32>
    %25 = vector.broadcast %14 : vector<1x32xf32> to vector<8x32xf32>
    %26 = arith.addf %24, %25 : vector<8x32xf32>
    %cst_14 = arith.constant 0.000000e+00 : f32
    %27 = vector.broadcast %cst_14 : f32 to vector<8x32xf32>
    %28 = arith.maximumf %26, %27 : vector<8x32xf32>
    %29 = vector.extract_strided_slice %3 {offsets = [1, 0], sizes = [1, 224], strides = [1, 1]} : vector<2x224xf32> to vector<1x224xf32>
    %30 = vector.broadcast %29 : vector<1x224xf32> to vector<8x224xf32>
    %31 = vector.broadcast %1 : vector<8x1xf32> to vector<8x224xf32>
    %32 = arith.cmpf oeq, %30, %31 : vector<8x224xf32>
    %33 = arith.extui %32 : vector<8x224xi1> to vector<8x224xi32>
    %34 = arith.sitofp %33 : vector<8x224xi32> to vector<8x224xf32>
    %35 = arith.mulf %11, %34 : vector<8x224xf32>
    %c0_15 = arith.constant 0 : index
    %c0_16 = arith.constant 0 : index
    %36 = vector.load %arg7[%c0_15, %c0_16] : memref<224x32xbf16, #tpu.memory_space<vmem>>, vector<224x32xbf16>
    %37 = arith.truncf %35 : vector<8x224xf32> to vector<8x224xbf16>
    %cst_17 = arith.constant dense<0.000000e+00> : vector<8x32xf32>
    %38 = tpu.matmul %37, %36, %cst_17 {dimension_numbers = #tpu.dot_dimension_numbers<[1], [0], [0], [1], [0, 0, 1, 1], [], []>} : vector<8x224xbf16>, vector<224x32xbf16>, vector<8x32xf32> -> vector<8x32xf32>
    %39 = vector.extract_strided_slice %4 {offsets = [2, 0], sizes = [1, 32], strides = [1, 1]} : vector<5x32xf32> to vector<1x32xf32>
    %40 = vector.broadcast %39 : vector<1x32xf32> to vector<8x32xf32>
    %41 = arith.addf %38, %40 : vector<8x32xf32>
    %42 = vector.extract_strided_slice %4 {offsets = [3, 0], sizes = [1, 32], strides = [1, 1]} : vector<5x32xf32> to vector<1x32xf32>
    %43 = vector.extract_strided_slice %4 {offsets = [4, 0], sizes = [1, 32], strides = [1, 1]} : vector<5x32xf32> to vector<1x32xf32>
    %cst_18 = arith.constant dense<0.000000e+00> : vector<8x32xf32>
    %44 = tpu.matmul %41, %5, %cst_18 {dimension_numbers = #tpu.dot_dimension_numbers<[1], [0], [0], [1], [0, 0, 1, 1], [], []>} : vector<8x32xf32>, vector<32x32xf32>, vector<8x32xf32> -> vector<8x32xf32>
    %45 = arith.subf %41, %44 : vector<8x32xf32>
    %46 = arith.mulf %45, %45 : vector<8x32xf32>
    %cst_19 = arith.constant dense<0.000000e+00> : vector<8x32xf32>
    %47 = tpu.matmul %46, %5, %cst_19 {dimension_numbers = #tpu.dot_dimension_numbers<[1], [0], [0], [1], [0, 0, 1, 1], [], []>} : vector<8x32xf32>, vector<32x32xf32>, vector<8x32xf32> -> vector<8x32xf32>
    %cst_20 = arith.constant 9.99999974E-6 : f32
    %48 = vector.broadcast %cst_20 : f32 to vector<8x32xf32>
    %49 = arith.addf %47, %48 : vector<8x32xf32>
    %50 = math.rsqrt %49 : vector<8x32xf32>
    %51 = arith.mulf %45, %50 : vector<8x32xf32>
    %52 = vector.broadcast %42 : vector<1x32xf32> to vector<8x32xf32>
    %53 = arith.mulf %51, %52 : vector<8x32xf32>
    %54 = vector.broadcast %43 : vector<1x32xf32> to vector<8x32xf32>
    %55 = arith.addf %53, %54 : vector<8x32xf32>
    %cst_21 = arith.constant 0.000000e+00 : f32
    %56 = vector.broadcast %cst_21 : f32 to vector<8x32xf32>
    %57 = arith.maximumf %55, %56 : vector<8x32xf32>
    %58 = arith.addf %57, %28 : vector<8x32xf32>
    %c0_22 = arith.constant 0 : index
    %c0_23 = arith.constant 0 : index
    %59 = vector.load %arg9[%c0_22, %c0_23] : memref<3x96xf32, #tpu.memory_space<vmem>>, vector<3x96xf32>
    %c0_24 = arith.constant 0 : index
    %c0_25 = arith.constant 0 : index
    %60 = vector.load %arg8[%c0_24, %c0_25] : memref<32x96xbf16, #tpu.memory_space<vmem>>, vector<32x96xbf16>
    %61 = arith.truncf %58 : vector<8x32xf32> to vector<8x32xbf16>
    %cst_26 = arith.constant dense<0.000000e+00> : vector<8x96xf32>
    %62 = tpu.matmul %61, %60, %cst_26 {dimension_numbers = #tpu.dot_dimension_numbers<[1], [0], [0], [1], [0, 0, 1, 1], [], []>} : vector<8x32xbf16>, vector<32x96xbf16>, vector<8x96xf32> -> vector<8x96xf32>
    %63 = vector.extract_strided_slice %59 {offsets = [0, 0], sizes = [1, 96], strides = [1, 1]} : vector<3x96xf32> to vector<1x96xf32>
    %64 = vector.broadcast %63 : vector<1x96xf32> to vector<8x96xf32>
    %65 = arith.addf %62, %64 : vector<8x96xf32>
    %c0_27 = arith.constant 0 : index
    %c0_28 = arith.constant 0 : index
    %66 = vector.load %arg10[%c0_27, %c0_28] : memref<96x96xf32, #tpu.memory_space<vmem>>, vector<96x96xf32>
    %67 = vector.extract_strided_slice %59 {offsets = [1, 0], sizes = [1, 96], strides = [1, 1]} : vector<3x96xf32> to vector<1x96xf32>
    %68 = vector.extract_strided_slice %59 {offsets = [2, 0], sizes = [1, 96], strides = [1, 1]} : vector<3x96xf32> to vector<1x96xf32>
    %cst_29 = arith.constant dense<0.000000e+00> : vector<8x96xf32>
    %69 = tpu.matmul %65, %66, %cst_29 {dimension_numbers = #tpu.dot_dimension_numbers<[1], [0], [0], [1], [0, 0, 1, 1], [], []>} : vector<8x96xf32>, vector<96x96xf32>, vector<8x96xf32> -> vector<8x96xf32>
    %70 = arith.subf %65, %69 : vector<8x96xf32>
    %71 = arith.mulf %70, %70 : vector<8x96xf32>
    %cst_30 = arith.constant dense<0.000000e+00> : vector<8x96xf32>
    %72 = tpu.matmul %71, %66, %cst_30 {dimension_numbers = #tpu.dot_dimension_numbers<[1], [0], [0], [1], [0, 0, 1, 1], [], []>} : vector<8x96xf32>, vector<96x96xf32>, vector<8x96xf32> -> vector<8x96xf32>
    %cst_31 = arith.constant 9.99999974E-6 : f32
    %73 = vector.broadcast %cst_31 : f32 to vector<8x96xf32>
    %74 = arith.addf %72, %73 : vector<8x96xf32>
    %75 = math.rsqrt %74 : vector<8x96xf32>
    %76 = arith.mulf %70, %75 : vector<8x96xf32>
    %77 = vector.broadcast %67 : vector<1x96xf32> to vector<8x96xf32>
    %78 = arith.mulf %76, %77 : vector<8x96xf32>
    %79 = vector.broadcast %68 : vector<1x96xf32> to vector<8x96xf32>
    %80 = arith.addf %78, %79 : vector<8x96xf32>
    %cst_32 = arith.constant 0.000000e+00 : f32
    %81 = vector.broadcast %cst_32 : f32 to vector<8x96xf32>
    %82 = arith.maximumf %80, %81 : vector<8x96xf32>
    %c0_33 = arith.constant 0 : index
    %c0_34 = arith.constant 0 : index
    %83 = vector.load %arg11[%c0_33, %c0_34] : memref<96x96xbf16, #tpu.memory_space<vmem>>, vector<96x96xbf16>
    %84 = arith.truncf %82 : vector<8x96xf32> to vector<8x96xbf16>
    %cst_35 = arith.constant dense<0.000000e+00> : vector<8x96xf32>
    %85 = tpu.matmul %84, %83, %cst_35 {dimension_numbers = #tpu.dot_dimension_numbers<[1], [0], [0], [1], [0, 0, 1, 1], [], []>} : vector<8x96xbf16>, vector<96x96xbf16>, vector<8x96xf32> -> vector<8x96xf32>
    %c0_36 = arith.constant 0 : index
    %c0_37 = arith.constant 0 : index
    %86 = vector.load %arg12[%c0_36, %c0_37] : memref<1x96xf32, #tpu.memory_space<vmem>>, vector<1x96xf32>
    %87 = vector.broadcast %86 : vector<1x96xf32> to vector<8x96xf32>
    %88 = arith.addf %85, %87 : vector<8x96xf32>
    %cst_38 = arith.constant 0.000000e+00 : f32
    %89 = vector.broadcast %cst_38 : f32 to vector<8x96xf32>
    %90 = arith.maximumf %88, %89 : vector<8x96xf32>
    %c0_39 = arith.constant 0 : index
    %c0_40 = arith.constant 0 : index
    %91 = vector.load %arg14[%c0_39, %c0_40] : memref<2x6xf32, #tpu.memory_space<vmem>>, vector<2x6xf32>
    %c0_41 = arith.constant 0 : index
    %c0_42 = arith.constant 0 : index
    %92 = vector.load %arg13[%c0_41, %c0_42] : memref<96x6xbf16, #tpu.memory_space<vmem>>, vector<96x6xbf16>
    %93 = arith.truncf %90 : vector<8x96xf32> to vector<8x96xbf16>
    %cst_43 = arith.constant dense<0.000000e+00> : vector<8x6xf32>
    %94 = tpu.matmul %93, %92, %cst_43 {dimension_numbers = #tpu.dot_dimension_numbers<[1], [0], [0], [1], [0, 0, 1, 1], [], []>} : vector<8x96xbf16>, vector<96x6xbf16>, vector<8x6xf32> -> vector<8x6xf32>
    %95 = vector.extract_strided_slice %91 {offsets = [0, 0], sizes = [1, 6], strides = [1, 1]} : vector<2x6xf32> to vector<1x6xf32>
    %96 = vector.broadcast %95 : vector<1x6xf32> to vector<8x6xf32>
    %97 = arith.addf %94, %96 : vector<8x6xf32>
    %98 = arith.negf %97 : vector<8x6xf32>
    %99 = math.exp %98 : vector<8x6xf32>
    %cst_44 = arith.constant 1.000000e+00 : f32
    %100 = vector.broadcast %cst_44 : f32 to vector<8x6xf32>
    %101 = arith.addf %100, %99 : vector<8x6xf32>
    %102 = arith.divf %100, %101 : vector<8x6xf32>
    %103 = vector.extract_strided_slice %91 {offsets = [1, 0], sizes = [1, 6], strides = [1, 1]} : vector<2x6xf32> to vector<1x6xf32>
    %104 = vector.broadcast %103 : vector<1x6xf32> to vector<8x6xf32>
    %105 = vector.broadcast %1 : vector<8x1xf32> to vector<8x6xf32>
    %106 = arith.cmpf oeq, %104, %105 : vector<8x6xf32>
    %107 = arith.extui %106 : vector<8x6xi1> to vector<8x6xi32>
    %108 = arith.sitofp %107 : vector<8x6xi32> to vector<8x6xf32>
    %109 = arith.mulf %102, %108 : vector<8x6xf32>
    %c0_45 = arith.constant 0 : index
    %c0_46 = arith.constant 0 : index
    %110 = vector.load %arg15[%c0_45, %c0_46] : memref<6x2xf32, #tpu.memory_space<vmem>>, vector<6x2xf32>
    %cst_47 = arith.constant dense<0.000000e+00> : vector<8x2xf32>
    %111 = tpu.matmul %109, %110, %cst_47 {dimension_numbers = #tpu.dot_dimension_numbers<[1], [0], [0], [1], [0, 0, 1, 1], [], []>} : vector<8x6xf32>, vector<6x2xf32>, vector<8x2xf32> -> vector<8x2xf32>
    %c0_48 = arith.constant 0 : index
    %c0_49 = arith.constant 0 : index
    %112 = vector.load %arg16[%c0_48, %c0_49] : memref<8x2xf32, #tpu.memory_space<vmem>>, vector<8x2xf32>
    tpu.vector_store %arg16[%c0_48, %c0_49], %111 {strides = array<i32>} : memref<8x2xf32, #tpu.memory_space<vmem>>, vector<8x2xf32>,
    return
  }
  func.func @transform_0(%arg0: i32) -> (i32, i32) {
    %c0_i32 = arith.constant 0 : i32
    %c0_i32_0 = arith.constant 0 : i32
    return %arg0, %c0_i32 : i32, i32
  }
  func.func @transform_1(%arg0: i32) -> (i32, i32) {
    %c0_i32 = arith.constant 0 : i32
    %c0_i32_0 = arith.constant 0 : i32
    return %arg0, %c0_i32 : i32, i32
  }
  func.func @transform_2(%arg0: i32) -> (i32, i32) {
    %c0_i32 = arith.constant 0 : i32
    %c0_i32_0 = arith.constant 0 : i32
    %c0_i32_1 = arith.constant 0 : i32
    return %c0_i32, %c0_i32_0 : i32, i32
  }
  func.func @transform_3(%arg0: i32) -> (i32, i32) {
    %c0_i32 = arith.constant 0 : i32
    %c0_i32_0 = arith.constant 0 : i32
    %c0_i32_1 = arith.constant 0 : i32
    return %c0_i32, %c0_i32_0 : i32, i32
  }
  func.func @transform_4(%arg0: i32) -> (i32, i32) {
    %c0_i32 = arith.constant 0 : i32
    %c0_i32_0 = arith.constant 0 : i32
    %c0_i32_1 = arith.constant 0 : i32
    return %c0_i32, %c0_i32_0 : i32, i32
  }
  func.func @transform_5(%arg0: i32) -> (i32, i32) {
    %c0_i32 = arith.constant 0 : i32
    %c0_i32_0 = arith.constant 0 : i32
    %c0_i32_1 = arith.constant 0 : i32
    return %c0_i32, %c0_i32_0 : i32, i32
  }
  func.func @transform_6(%arg0: i32) -> (i32, i32) {
    %c0_i32 = arith.constant 0 : i32
    %c0_i32_0 = arith.constant 0 : i32
    %c0_i32_1 = arith.constant 0 : i32
    return %c0_i32, %c0_i32_0 : i32, i32
  }
  func.func @transform_7(%arg0: i32) -> (i32, i32) {
    %c0_i32 = arith.constant 0 : i32
    %c0_i32_0 = arith.constant 0 : i32
    %c0_i32_1 = arith.constant 0 : i32
    return %c0_i32, %c0_i32_0 : i32, i32
  }
  func.func @transform_8(%arg0: i32) -> (i32, i32) {
    %c0_i32 = arith.constant 0 : i32
    %c0_i32_0 = arith.constant 0 : i32
    %c0_i32_1 = arith.constant 0 : i32
    return %c0_i32, %c0_i32_0 : i32, i32
  }
  func.func @transform_9(%arg0: i32) -> (i32, i32) {
    %c0_i32 = arith.constant 0 : i32
    %c0_i32_0 = arith.constant 0 : i32
    %c0_i32_1 = arith.constant 0 : i32
    return %c0_i32, %c0_i32_0 : i32, i32
  }
  func.func @transform_10(%arg0: i32) -> (i32, i32) {
    %c0_i32 = arith.constant 0 : i32
    %c0_i32_0 = arith.constant 0 : i32
    %c0_i32_1 = arith.constant 0 : i32
    return %c0_i32, %c0_i32_0 : i32, i32
  }
  func.func @transform_11(%arg0: i32) -> (i32, i32) {
    %c0_i32 = arith.constant 0 : i32
    %c0_i32_0 = arith.constant 0 : i32
    %c0_i32_1 = arith.constant 0 : i32
    return %c0_i32, %c0_i32_0 : i32, i32
  }
  func.func @transform_12(%arg0: i32) -> (i32, i32) {
    %c0_i32 = arith.constant 0 : i32
    %c0_i32_0 = arith.constant 0 : i32
    %c0_i32_1 = arith.constant 0 : i32
    return %c0_i32, %c0_i32_0 : i32, i32
  }
  func.func @transform_13(%arg0: i32) -> (i32, i32) {
    %c0_i32 = arith.constant 0 : i32
    %c0_i32_0 = arith.constant 0 : i32
    %c0_i32_1 = arith.constant 0 : i32
    return %c0_i32, %c0_i32_0 : i32, i32
  }
  func.func @transform_14(%arg0: i32) -> (i32, i32) {
    %c0_i32 = arith.constant 0 : i32
    %c0_i32_0 = arith.constant 0 : i32
    %c0_i32_1 = arith.constant 0 : i32
    return %c0_i32, %c0_i32_0 : i32, i32
  }
  func.func @transform_15(%arg0: i32) -> (i32, i32) {
    %c0_i32 = arith.constant 0 : i32
    %c0_i32_0 = arith.constant 0 : i32
    return %arg0, %c0_i32 : i32, i32
  }
}

</mosaic_0001>

<bundles_post_ra>
// kernel: tpu_custom_call.1
= control target key start
LH: loop header
LB: loop body
LE: loop exit
PB: predicated region body
PF: predicated region fallthrough
CT: control target
= control target key end

     0   :  { %20 = vsyncpa [#allocation3], 0  ;;  %s2104_s0 = inlined_call_operand.vmem [shape: s32[8,1], index: 0, kind: input, shape index: {}]   ;;  %s2105_s1 = inlined_call_operand.hbm [shape: f32[8,32], index: 1, kind: input, shape index: {}]   ;;  %s2106_s2 = inlined_call_operand.vmem [shape: bf16[32,224], index: 2, kind: input, shape index: {}]   ;;  %s2107_s3 = inlined_call_operand.hbm [shape: f32[2,224], index: 3, kind: input, shape index: {}]   ;;  %s2108_s4 = inlined_call_operand.hbm [shape: f32[5,32], index: 4, kind: input, shape index: {}]   ;;  %s2109_s5 = inlined_call_operand.hbm [shape: f32[32,32], index: 5, kind: input, shape index: {}]   ;;  %s2110_s6 = inlined_call_operand.vmem [shape: bf16[224,32], index: 6, kind: input, shape index: {}]   ;;  %s2111_s7 = inlined_call_operand.vmem [shape: bf16[32,96], index: 7, kind: input, shape index: {}]   ;;  %s2112_s8 = inlined_call_operand.hbm [shape: f32[3,96], index: 8, kind: input, shape index: {}]   ;;  %s2113_s9 = inlined_call_operand.vmem [shape: f32[96,96], index: 9, kind: input, shape index: {}]   ;;  %s2114_s10 = inlined_call_operand.vmem [shape: bf16[96,96], index: 10, kind: input, shape index: {}]   ;;  %s2115_s11 = inlined_call_operand.vmem [shape: f32[1,96], index: 11, kind: input, shape index: {}]   ;;  %s2116_s12 = inlined_call_operand.vmem [shape: bf16[96,6], index: 12, kind: input, shape index: {}]   ;;  %s2117_s13 = inlined_call_operand.vmem [shape: f32[2,6], index: 13, kind: input, shape index: {}]   ;;  %s2118_s14 = inlined_call_operand.vmem [shape: f32[6,2], index: 14, kind: input, shape index: {}]   ;;  %s2119_s15 = inlined_call_operand.vmem [shape: f32[8,2], index: 15, kind: output, shape index: {}]  }
   0x1   :  { %21 = vsyncpa [#allocation5], 0 }
   0x2   :  { %22 = vsyncpa [#allocation8], 0  ;;  %s1681_s18 = smov [#allocation4]   ;;  %s1682_s20 = smov [#allocation7]  }
   0x3   :  { %s43_s19 = sshll.u32 %s1681_s18, 4  ;;  %s62_s21 = sshll.u32 %s1682_s20, 4  ;;  %s44_s19 = int_to_ptr.vmem [resolvable:$true] %s43_s19  ;;  %s63_s21 = int_to_ptr.vmem [resolvable:$true] %s62_s21 }
   0x4   :  { %s1583_s22 = scalar_lea.vmem %s44_s19, 64  ;;  %p1588_p1 = scmp.lt.s32.totalorder %s44_s19, %s44_s19 }
   0x5   :  { %p1584_p0 = scmp.ne.s32.totalorder %s44_s19, %s1583_s22  ;;  %p1589_p2 = scmp.lt.s32.totalorder %s1583_s22, %s1583_s22 }
   0x7   :  { %p1590_p3 = por %p1589_p2, %p1588_p1 }
   0x9   :  { %p1591_p4 = pnand %p1590_p3, %p1584_p0 }
   0xb   :  { %1594 = shalt.err (!%p1591_p4)
}
   0xc   :  { %46 = dma.hbm_to_vmem [thread:$0]  %s2107_s3, 64, %s44_s19, [#allocation5]  }
   0xd   :  { %s1603_s25 = scalar_lea.vmem %s63_s21, 512  ;;  %p1608_p6 = scmp.lt.s32.totalorder %s63_s21, %s63_s21 }
   0xe   :  { %p1604_p5 = scmp.ne.s32.totalorder %s63_s21, %s1603_s25  ;;  %p1609_p7 = scmp.lt.s32.totalorder %s1603_s25, %s1603_s25 }
  0x10   :  { %p1610_p8 = por %p1609_p7, %p1608_p6 }
  0x12   :  { %p1611_p9 = pnand %p1610_p8, %p1604_p5 }
  0x14   :  { %1614 = shalt.err (!%p1611_p9)
}
  0x15   :  { %s1683_s26 = smov 128   ;;  %s1684_s27 = smov 8  }
  0x16   :  { %68 = dma.hbm_to_vmem [thread:$0]  %s2109_s5, 512, %s63_s21, [#allocation8], %s1683_s26, %s1683_s26, %s1684_s27  }
  0x17   :  { %s1685_s30 = smov [#allocation2]   ;;  %s1686_s17 = smov [#allocation6]  }
  0x18   :  { %s31_s16 = sshll.u32 %s1685_s30, 4  ;;  %s53_s18 = sshll.u32 %s1686_s17, 4  ;;  %s32_s16 = int_to_ptr.vmem [resolvable:$true] %s31_s16  ;;  %s54_s18 = int_to_ptr.vmem [resolvable:$true] %s53_s18 }
  0x19   :  { %s1623_s3 = scalar_lea.vmem %s32_s16, 128  ;;  %p1628_p11 = scmp.lt.s32.totalorder %s32_s16, %s32_s16 }
  0x1a   :  { %p1624_p10 = scmp.ne.s32.totalorder %s32_s16, %s1623_s3  ;;  %p1629_p12 = scmp.lt.s32.totalorder %s1623_s3, %s1623_s3 }
  0x1c   :  { %p1630_p13 = por %p1629_p12, %p1628_p11 }
  0x1e   :  { %p1631_p0 = pnand %p1630_p13, %p1624_p10 }
  0x20   :  { %1634 = shalt.err (!%p1631_p0)
}
  0x21   :  { %34 = dma.hbm_to_vmem [thread:$0]  %s2105_s1, 128, %s32_s16, [#allocation3]  }
  0x22   :  { %s1643_s22 = scalar_lea.vmem %s54_s18, 128  ;;  %p1648_p2 = scmp.lt.s32.totalorder %s54_s18, %s54_s18 }
  0x23   :  { %p1644_p1 = scmp.ne.s32.totalorder %s54_s18, %s1643_s22  ;;  %p1649_p3 = scmp.lt.s32.totalorder %s1643_s22, %s1643_s22 }
  0x25   :  { %p1650_p4 = por %p1649_p3, %p1648_p2 }
  0x27   :  { %p1651_p5 = pnand %p1650_p4, %p1644_p1 }
  0x29   :  { %1654 = shalt.err (!%p1651_p5)
}
  0x2a   :  { %56 = dma.hbm_to_vmem [thread:$0]  %s2108_s4, 128, %s54_s18, [#allocation5]  }
  0x2b   :  { %s1687_s23 = smov [#allocation9]  }
  0x2c   :  { %s79_s24 = sshll.u32 %s1687_s23, 4  ;;  %s80_s24 = int_to_ptr.vmem [resolvable:$true] %s79_s24 }
  0x2d   :  { %s1663_s25 = scalar_lea.vmem %s80_s24, 64  ;;  %p1668_p7 = scmp.lt.s32.totalorder %s80_s24, %s80_s24 }
  0x2e   :  { %p1664_p6 = scmp.ne.s32.totalorder %s80_s24, %s1663_s25  ;;  %p1669_p8 = scmp.lt.s32.totalorder %s1663_s25, %s1663_s25 }
  0x30   :  { %p1670_p9 = por %p1669_p8, %p1668_p7 }
  0x32   :  { %p1671_p10 = pnand %p1670_p9, %p1664_p6 }
  0x34   :  { %1674 = shalt.err (!%p1671_p10)
}
  0x35   :  { %82 = dma.hbm_to_vmem [thread:$0]  %s2112_s8, 64, %s80_s24, [#allocation8]  }
  0x36   :  { %1675 = dma.done.wait [#allocation3], 128  }
  0x37   :  { %1676 = vsyncadd [#allocation3], 4294967168 }
  0x38   :  { %1677 = dma.done.wait [#allocation5], 192  }
  0x39   :  { %1678 = vsyncadd [#allocation5], 4294967104 }
  0x3a   :  { %1679 = dma.done.wait [#allocation8], 576  }
  0x3b   :  { %1680 = vsyncadd [#allocation8], 4294966720  ;;  %v1688_v0 = vmov 0   ;;  %v1689_v1 = vmov 0.0   ;;  %v1531_v2 = vld [vmem:[%s2106_s2 + $0x14] ss:$8 sps:$4 sm:$0xff]   ;;  %v126_v14 = vlaneseq }
  0x3c   :  { %200 = vmatprep.mubr.bf16.mxu1 %v1688_v0  ;;  %1530 = vset.pattern.permute.xlu0 %v1688_v0  ;;  %v1533_v3 = vld [vmem:[%s2106_s2 + $0x10] ss:$8 sps:$4 sm:$0xff]   ;;  %v1534_v4 = vld [vmem:[%s2106_s2 + $0x4] ss:$8 sps:$4 sm:$0xff]   ;;  %v1536_v5 = vld [vmem:[%s2106_s2] ss:$8 sps:$4 sm:$0xff]  }
  0x3d   :  { %1388 = vmatprep.subr.mxu0 %v1689_v1  ;;  %180 = vmatprep.subr.bf16.mxu1 %v1531_v2  ;;  %v113_v6 = vld [vmem:[#allocation2] sm:$0xff]  ;;  %v111_v7 = vld [vmem:[%s2104_s0] sm:$0xff]  ;;  %v1804_v8 = vld [vmem:[#allocation7 + $0x18] sm:$0xff]  ;;  %vm164_vm0 = vcmask 261120   ;;  %vm1690_vm1 = vmmov 0   ;;  %v1834_v15 = vshrl.u32 %v126_v14, 7 }
  0x3e   :  { %181 = vmatpush1.bf16.msra.mxu1 %v1533_v3  ;;  %v112_v9 = vcvt.s32.f32 %v111_v7  ;;  %v1806_v10 = vld [vmem:[#allocation7 + $0x10] sm:$0xff]  ;;  %1389 = vmatpush3.msra.mxu0 %v1804_v8  ;;  %v1809_v11 = vld [vmem:[#allocation7 + $0x8] sm:$0xff]  ;;  %v124_v12 = vpack.c.bf16 %v113_v6, %v113_v6  ;;  %v1824_v13 = vld [vmem:[#allocation7] sm:$0xff]  ;;  %vm519_vm3 = vcmask 785408   ;;  %vm1179_vm5 = vcmask 1045504  }
  0x3f   :  { %182 = vmatprep.subr.bf16.mxu1 %v1534_v4  ;;  %1390 = vmatprep.subr.mxu0 %v1689_v1  ;;  %v376_v16 = vsub.s32 3, %v1834_v15  ;;  %v1838_v17 = vsub.s32 0, %v1834_v15  ;;  %v114_v18 = vld [vmem:[#allocation4] sm:$0xf]  ;;  %v1843_v20 = vsub.s32 2, %v1834_v15  ;;  %v1847_v22 = vsub.s32 1, %v1834_v15 }
  0x40   :  { %390 = vperm.xlu0 %1530, %v112_v9   ;;  %1391 = vmatpush3.msra.mxu0 %v1806_v10  ;;  %v1537_v29 = vld [vmem:[%s2110_s6 + $0x38] sm:$0xff]   ;;  %v1538_v35 = vld [vmem:[%s2110_s6 + $0x30] sm:$0xff]   ;;  %v1539_v39 = vld [vmem:[%s2110_s6 + $0x28] sm:$0xff]   ;;  %vm1175_vm7 = vcmask 48128   ;;  %vm1253_vm8 = vcmask 15360  }
  0x41   :  { %1392 = vmatprep.subr.mxu0 %v1689_v1  ;;  %1396 = vmatprep.mubr.msk.f32.mxu0 %vm1690_vm1, %v1689_v1  ;;  %v377_v19 = vrot.slane %v114_v18, %v376_v16  ;;  %v129_v21 = vrot.slane %v114_v18, %v1838_v17  ;;  %v133_v24 = vrot.slane %v114_v18, %v1843_v20  ;;  %v1540_v40 = vld [vmem:[%s2110_s6 + $0x20] sm:$0xff]   ;;  %v1541_v41 = vld [vmem:[%s2110_s6 + $0x18] sm:$0xff]   ;;  %v1542_v42 = vld [vmem:[%s2110_s6 + $0x10] sm:$0xff]  }
  0x42   :  { %183 = vmatpush1.bf16.msra.mxu1 %v1536_v5  ;;  %1393 = vmatpush3.msra.mxu0 %v1809_v11  ;;  %v1543_v43 = vld [vmem:[%s2110_s6 + $0x8] sm:$0xff]   ;;  %v1544_v44 = vld [vmem:[%s2110_s6] sm:$0xff]   ;;  %v373_v47 = vrot.slane %v114_v18, %v1847_v22  ;;  %v1547_v48 = vld [vmem:[%s2110_s6 + $0x58] sm:$0xff]  }
  0x43   :  { %1377 = vmatprep.subr.mxu1 %v1689_v1  ;;  %1394 = vmatprep.subr.mxu0 %v1689_v1  ;;  %v387_v23 = vrot.slane %v377_v19, %v1847_v22  ;;  %v139_v25 = vrot.slane %v129_v21, %v1838_v17  ;;  %v143_v27 = vrot.slane %v133_v24, %v1838_v17  ;;  %v1545_v45 = vld [vmem:[%s2110_s6 + $0x68] sm:$0xff]   ;;  %v1546_v46 = vld [vmem:[%s2110_s6 + $0x60] sm:$0xff]   ;;  %v1548_v50 = vld [vmem:[%s2110_s6 + $0x50] sm:$0xff]  }
  0x44   :  { %1395 = vmatpush3.msra.mxu0 %v1824_v13  ;;  %v383_v49 = vrot.slane %v373_v47, %v1847_v22  ;;  %v1549_v51 = vld [vmem:[%s2110_s6 + $0x48] sm:$0xff]   ;;  %v1550_v53 = vld [vmem:[%s2110_s6 + $0x40] sm:$0xff]   ;;  %v115_v60 = vld [vmem:[#allocation6] sm:$0x1f] }
  0x45   :  { %1266 = vmatmul.mubr.msk.bf16.vlgmr.msra.gmra.mxu1 %vm164_vm0, %v124_v12  ;;  %1399 = vmatprep.subr.mxu0 %v1689_v1  ;;  %v434_v61 = vrot.slane %v115_v60, %v1843_v20  ;;  %v362_v7 = vrot.slane %v115_v60, %v1838_v17  ;;  %v367_v9 = vrot.slane %v115_v60, %v1847_v22  ;;  %v791_v47 = vld [vmem:[%s2113_s9 + $0x8] sm:$0xff] }
  0x46   :  { %1378 = vmatpush3.msra.mxu1 %v1804_v8  ;;  %1385 = vmatprep.mubr.msk.f32.mxu1 %vm1690_vm1, %v1689_v1 }
  0x47   :  { %1379 = vmatprep.subr.mxu1 %v1689_v1 }
  0x48   :  { %1380 = vmatpush3.msra.mxu1 %v1806_v10 }
  0x49   :  { %1381 = vmatprep.subr.mxu1 %v1689_v1 }
  0x4a   :  { %1382 = vmatpush3.msra.mxu1 %v1809_v11 }
  0x4b   :  { %1383 = vmatprep.subr.mxu1 %v1689_v1 }
  0x4c   :  { %1384 = vmatpush3.msra.mxu1 %v1824_v13 }
  0x4d   :  { %523 = vmatprep.subr.bf16.mxu1 %v1688_v0 }
  0xbb   :  { %v1852_v26 = vpop.permute.xlu0 %390 }
  0xbc   :  { %vm394_vm2 = vcmp.eq.f32.partialorder %v387_v23, %v1852_v26  ;;  %vm393_vm4 = vcmp.eq.f32.partialorder %v383_v49, %v1852_v26  ;;  %v1552_v23 = vld [vmem:[%s2111_s7] sm:$0xff]   ;;  %v2011_v49 = vld [vmem:[#allocation9] sm:$0x7] }
  0xbd   :  { %v1270_v31 = vsel %vm394_vm2, 1.0, %v1689_v1  ;;  %v1269_v52 = vsel %vm393_vm4, 1.0, %v1689_v1 }
 0x105   :  { %v202_v28 = vpop.f32.mrf.mxu1 }
 0x106   :  { %v203_v30 = vadd.f32 %v202_v28, %v139_v25  ;;  %v720_v28 = vsub.s32 4, %v1834_v15  ;;  %v800_v15 = vld [vmem:[%s2113_s9 + $0x50] sm:$0xff] }
 0x107   :  { %v204_v32 = vpop.f32.mrf.mxu1 }
 0x108   :  { %v205_v33 = vadd.f32 %v204_v32, %v143_v27  ;;  %1386 = vmatmul.mubr.msk.f32.vlgmr.msra.gmra.mxu1 %vm164_vm0, %v203_v30  ;;  %v399_v54 = vmul.f32 %v1269_v52, %v203_v30 }
 0x109   :  { %524 = vmatpush1.bf16.msra.mxu1 %v1537_v29  ;;  %v206_v34 = vpop.f32.mrf.mxu1  ;;  %v716_v29 = vrot.slane %v115_v60, %v376_v16  ;;  %v799_v16 = vld [vmem:[%s2113_s9 + $0x48] sm:$0xff] }
 0x10a   :  { %v400_v36 = vmul.f32 %v1270_v31, %v205_v33  ;;  %525 = vmatprep.subr.bf16.mxu1 %v1688_v0  ;;  %v429_v55 = vpack.c.bf16 %v399_v54, %v399_v54  ;;  %v721_v31 = vrot.slane %v115_v60, %v720_v28  ;;  %v1553_v60 = vld [vmem:[%s2114_s10 + $0x28] sm:$0xff]  }
 0x10b   :  { %v207_v37 = vpop.f32.mrf.mxu1 }
 0x10c   :  { %v430_v38 = vpack.c.bf16 %v400_v36, %v400_v36 }
 0x10d   :  { %526 = vmatpush1.bf16.msra.mxu1 %v1538_v35 }
 0x10e   :  { %1285 = vmatprep.mubr.msk.bf16.mxu1 %vm519_vm3, %v430_v38  ;;  %527 = vmatprep.subr.bf16.mxu1 %v1688_v0 }
 0x111   :  { %528 = vmatpush1.bf16.msra.mxu1 %v1539_v39  ;;  %v801_v39 = vld [vmem:[%s2113_s9 + $0x58] sm:$0xff] }
 0x112   :  { %529 = vmatprep.subr.bf16.mxu1 %v1688_v0 }
 0x115   :  { %530 = vmatpush1.bf16.msra.mxu1 %v1540_v40  ;;  %v798_v40 = vld [vmem:[%s2113_s9 + $0x40] sm:$0xff] }
 0x116   :  { %531 = vmatprep.subr.bf16.mxu1 %v1688_v0 }
 0x119   :  { %532 = vmatpush1.bf16.msra.mxu1 %v1541_v41  ;;  %v797_v41 = vld [vmem:[%s2113_s9 + $0x38] sm:$0xff] }
 0x11a   :  { %533 = vmatprep.subr.bf16.mxu1 %v1688_v0 }
 0x11d   :  { %534 = vmatpush1.bf16.msra.mxu1 %v1542_v42  ;;  %v796_v42 = vld [vmem:[%s2113_s9 + $0x30] sm:$0xff] }
 0x11e   :  { %535 = vmatprep.subr.bf16.mxu1 %v1688_v0 }
 0x121   :  { %536 = vmatpush1.bf16.msra.mxu1 %v1543_v43  ;;  %v795_v43 = vld [vmem:[%s2113_s9 + $0x28] sm:$0xff] }
 0x122   :  { %537 = vmatprep.subr.bf16.mxu1 %v1688_v0 }
 0x125   :  { %538 = vmatpush1.bf16.msra.mxu1 %v1544_v44  ;;  %v794_v44 = vld [vmem:[%s2113_s9 + $0x20] sm:$0xff] }
 0x126   :  { %543 = vmatprep.subr.bf16.mxu1 %v1688_v0 }
 0x129   :  { %544 = vmatpush2.bf16.msra.mxu1 %v1545_v45  ;;  %v793_v45 = vld [vmem:[%s2113_s9 + $0x18] sm:$0xff] }
 0x12a   :  { %545 = vmatprep.subr.bf16.mxu1 %v1688_v0 }
 0x12d   :  { %546 = vmatpush2.bf16.msra.mxu1 %v1546_v46  ;;  %v792_v46 = vld [vmem:[%s2113_s9 + $0x10] sm:$0xff] }
 0x12e   :  { %547 = vmatprep.subr.bf16.mxu1 %v1688_v0 }
 0x131   :  { %548 = vmatpush2.bf16.msra.mxu1 %v1547_v48  ;;  %v790_v48 = vld [vmem:[%s2113_s9] sm:$0xff] }
 0x132   :  { %549 = vmatprep.subr.bf16.mxu1 %v1688_v0 }
 0x135   :  { %550 = vmatpush2.bf16.msra.mxu1 %v1548_v50  ;;  %v734_v50 = vrot.slane %v2011_v49, %v1838_v17 }
 0x136   :  { %551 = vmatprep.subr.bf16.mxu1 %v1688_v0 }
 0x139   :  { %552 = vmatpush2.bf16.msra.mxu1 %v1549_v51 }
 0x13a   :  { %553 = vmatprep.subr.bf16.mxu1 %v1688_v0 }
 0x13d   :  { %554 = vmatpush2.bf16.msra.mxu1 %v1550_v53 }
 0x13e   :  { %1483 = vmatprep.subr.bf16.mxu1 %v1689_v1 }
 0x140   :  { %556 = vmatmul.mubr.bf16.vlgmr.msra.gmra.mxu1 %v429_v55 }
 0x141   :  { %1495 = vmatprep.mubr.msk.bf16.mxu1 %vm1690_vm1, %v1689_v1  ;;  %1484 = vmatpush3.bf16.msra.mxu1 %v1553_v60 }
 0x142   :  { %1485 = vmatprep.subr.bf16.mxu1 %v1689_v1 }
 0x1c8   :  { %v278_v56 = vpop.f32.mrf.mxu1 }
 0x1c9   :  { %v282_v57 = vsub.f32 %v203_v30, %v278_v56 }
 0x1ca   :  { %v1387_v58 = vpop.f32.mrf.mxu1 }
 0x1cb   :  { %v283_v59 = vmul.f32 %v282_v57, %v282_v57 }
 0x1cd   :  { %1397 = vmatmul.mubr.msk.f32.vlgmr.msra.gmra.mxu0 %vm164_vm0, %v283_v59 }
 0x1ce   :  { %1400 = vmatpush3.msra.mxu0 %v1804_v8  ;;  %1407 = vmatprep.mubr.msk.f32.mxu0 %vm1690_vm1, %v1689_v1 }
 0x1cf   :  { %1401 = vmatprep.subr.mxu0 %v1689_v1 }
 0x1d0   :  { %1402 = vmatpush3.msra.mxu0 %v1806_v10 }
 0x1d1   :  { %1403 = vmatprep.subr.mxu0 %v1689_v1 }
 0x1d2   :  { %1404 = vmatpush3.msra.mxu0 %v1809_v11 }
 0x1d3   :  { %1405 = vmatprep.subr.mxu0 %v1689_v1 }
 0x1d4   :  { %1406 = vmatpush3.msra.mxu0 %v1824_v13 }
 0x1d5   :  { %1410 = vmatprep.subr.mxu0 %v1689_v1 }
 0x200   :  { %v557_v62 = vpop.f32.mrf.mxu1 }
 0x201   :  { %v558_v63 = vadd.f32 %v557_v62, %v434_v61  ;;  %v1554_v61 = vld [vmem:[%s2114_s10 + $0x20] sm:$0xff]   ;;  %v1555_v62 = vld [vmem:[%s2114_s10 + $0x18] sm:$0xff]  }
 0x202   :  { %v559_v0 = vpop.f32.mrf.mxu1  ;;  %1486 = vmatpush3.bf16.msra.mxu1 %v1554_v61 }
 0x203   :  { %1408 = vmatmul.mubr.msk.f32.vlgmr.msra.gmra.mxu0 %vm164_vm0, %v558_v63  ;;  %1487 = vmatprep.subr.bf16.mxu1 %v1689_v1  ;;  %v1557_v0 = vld [vmem:[%s2114_s10 + $0x8] sm:$0xff]  }
 0x204   :  { %v560_v2 = vpop.f32.mrf.mxu1  ;;  %1411 = vmatpush3.msra.mxu0 %v1804_v8  ;;  %1418 = vmatprep.mubr.msk.f32.mxu0 %vm1690_vm1, %v1689_v1 }
 0x205   :  { %1412 = vmatprep.subr.mxu0 %v1689_v1  ;;  %v1558_v2 = vld [vmem:[%s2114_s10] sm:$0xff]  }
 0x206   :  { %v561_v3 = vpop.f32.mrf.mxu1  ;;  %1413 = vmatpush3.msra.mxu0 %v1806_v10  ;;  %1488 = vmatpush3.bf16.msra.mxu1 %v1555_v62 }
 0x207   :  { %1414 = vmatprep.subr.mxu0 %v1689_v1  ;;  %1489 = vmatprep.subr.bf16.mxu1 %v1689_v1  ;;  %v1559_v3 = vld [vmem:[%s2116_s12 + $0x28] sm:$0xff]  }
 0x208   :  { %1415 = vmatpush3.msra.mxu0 %v1809_v11 }
 0x209   :  { %1416 = vmatprep.subr.mxu0 %v1689_v1 }
 0x20a   :  { %1417 = vmatpush3.msra.mxu0 %v1824_v13  ;;  %v1551_v13 = vld [vmem:[%s2111_s7 + $0x8] sm:$0xff]  }
 0x20b   :  { %1421 = vmatprep.subr.bf16.mxu0 %v1689_v1 }
 0x28d   :  { %v353_v4 = vpop.f32.mrf.mxu0 }
 0x28e   :  { %v354_v5 = vadd.f32 1e-05, %v353_v4  ;;  %v1560_v4 = vld [vmem:[%s2116_s12 + $0x20] sm:$0xff]  }
 0x28f   :  { %v1398_v6 = vpop.f32.mrf.mxu0 }
 0x290   :  { %1565 = vrsqrt.f32 %v354_v5  ;;  %v1561_v5 = vld [vmem:[%s2116_s12 + $0x18] sm:$0xff]   ;;  %v1562_v6 = vld [vmem:[%s2116_s12 + $0x10] sm:$0xff]  }
 0x29d   :  { %v1566_v8 = vpop.eup %1565 }
 0x29e   :  { %v358_v10 = vmul.f32 %v1566_v8, %v282_v57 }
 0x2a0   :  { %v363_v12 = vmul.f32 %v362_v7, %v358_v10  ;;  %v955_v10 = vrot.slane %v2011_v49, %v1847_v22 }
 0x2a2   :  { %v368_v14 = vadd.f32 %v367_v9, %v363_v12 }
 0x2a4   :  { %v369_v35 = vmax.f32 %v368_v14, 0.0  ;;  %v960_v14 = vrot.slane %v2011_v49, %v1843_v20  ;;  %v1564_v20 = vld [vmem:[%s2116_s12] sm:$0xff]  }
 0x2c3   :  { %v632_v18 = vpop.f32.mrf.mxu0 }
 0x2c4   :  { %v636_v11 = vsub.f32 %v558_v63, %v632_v18  ;;  %v1556_v63 = vld [vmem:[%s2114_s10 + $0x10] sm:$0xff]  }
 0x2c5   :  { %v1409_v19 = vpop.f32.mrf.mxu0  ;;  %1490 = vmatpush3.bf16.msra.mxu1 %v1556_v63 }
 0x2c6   :  { %v637_v21 = vmul.f32 %v636_v11, %v636_v11  ;;  %1491 = vmatprep.subr.bf16.mxu1 %v1689_v1 }
 0x2c8   :  { %1419 = vmatmul.mubr.msk.f32.vlgmr.msra.gmra.mxu0 %vm164_vm0, %v637_v21 }
 0x2c9   :  { %1425 = vmatprep.mubr.msk.bf16.mxu0 %vm1690_vm1, %v1689_v1  ;;  %1422 = vmatpush3.bf16.msra.mxu0 %v1551_v13 }
 0x2ca   :  { %1423 = vmatprep.subr.bf16.mxu0 %v1689_v1  ;;  %1492 = vmatpush3.bf16.msra.mxu1 %v1557_v0 }
 0x2cb   :  { %1493 = vmatprep.subr.bf16.mxu1 %v1689_v1 }
 0x2cd   :  { %1424 = vmatpush3.bf16.msra.mxu0 %v1552_v23  ;;  %v1563_v23 = vld [vmem:[%s2116_s12 + $0x8] sm:$0xff]  }
 0x2ce   :  { %1429 = vmatprep.subr.mxu0 %v1689_v1  ;;  %1494 = vmatpush3.bf16.msra.mxu1 %v1558_v2 }
 0x2cf   :  { %1515 = vmatprep.subr.mxu1 %v1689_v1 }
 0x388   :  { %v707_v24 = vpop.f32.mrf.mxu0 }
 0x389   :  { %v708_v25 = vadd.f32 1e-05, %v707_v24  ;;  %v1293_v24 = vld [vmem:[%s2115_s11] ss:$0 sm:$0xff] }
 0x38a   :  { %v1420_v27 = vpop.f32.mrf.mxu0 }
 0x38b   :  { %1567 = vrsqrt.f32 %v708_v25 }
 0x398   :  { %v1568_v30 = vpop.eup %1567 }
 0x399   :  { %v712_v32 = vmul.f32 %v1568_v30, %v636_v11 }
 0x39b   :  { %v717_v33 = vmul.f32 %v716_v29, %v712_v32 }
 0x39d   :  { %v722_v34 = vadd.f32 %v721_v31, %v717_v33  ;;  %v1174_v33 = vld [vmem:[%s2118_s14] sm:$0x3f] }
 0x39f   :  { %v723_v36 = vmax.f32 %v722_v34, 0.0  ;;  %v1063_v34 = vld [vmem:[%s2117_s13] sm:$0x3] }
 0x3a1   :  { %v724_v37 = vadd.f32 %v723_v36, %v369_v35  ;;  %v1080_v35 = vrot.slane %v1063_v34, %v1838_v17 }
 0x3a3   :  { %v730_v38 = vpack.c.bf16 %v724_v37, %v724_v37 }
 0x3a5   :  { %1426 = vmatmul.mubr.msk.bf16.vlgmr.msra.gmra.mxu0 %vm164_vm0, %v730_v38 }
 0x3a6   :  { %1430 = vmatpush3.msra.mxu0 %v801_v39  ;;  %1453 = vmatprep.mubr.msk.f32.mxu0 %vm1690_vm1, %v1689_v1 }
 0x3a7   :  { %1431 = vmatprep.subr.mxu0 %v1689_v1 }
 0x3a8   :  { %1432 = vmatpush3.msra.mxu0 %v800_v15 }
 0x3a9   :  { %1433 = vmatprep.subr.mxu0 %v1689_v1 }
 0x3aa   :  { %1434 = vmatpush3.msra.mxu0 %v799_v16 }
 0x3ab   :  { %1435 = vmatprep.subr.mxu0 %v1689_v1 }
 0x3ac   :  { %1436 = vmatpush3.msra.mxu0 %v798_v40 }
 0x3ad   :  { %1437 = vmatprep.subr.mxu0 %v1689_v1 }
 0x3ae   :  { %1438 = vmatpush3.msra.mxu0 %v797_v41 }
 0x3af   :  { %1439 = vmatprep.subr.mxu0 %v1689_v1 }
 0x3b0   :  { %1440 = vmatpush3.msra.mxu0 %v796_v42 }
 0x3b1   :  { %1441 = vmatprep.subr.mxu0 %v1689_v1 }
 0x3b2   :  { %1442 = vmatpush3.msra.mxu0 %v795_v43 }
 0x3b3   :  { %1443 = vmatprep.subr.mxu0 %v1689_v1 }
 0x3b4   :  { %1444 = vmatpush3.msra.mxu0 %v794_v44 }
 0x3b5   :  { %1445 = vmatprep.subr.mxu0 %v1689_v1 }
 0x3b6   :  { %1446 = vmatpush3.msra.mxu0 %v793_v45 }
 0x3b7   :  { %1447 = vmatprep.subr.mxu0 %v1689_v1 }
 0x3b8   :  { %1448 = vmatpush3.msra.mxu0 %v792_v46 }
 0x3b9   :  { %1449 = vmatprep.subr.mxu0 %v1689_v1 }
 0x3ba   :  { %1450 = vmatpush3.msra.mxu0 %v791_v47 }
 0x3bb   :  { %1451 = vmatprep.subr.mxu0 %v1689_v1 }
 0x3bc   :  { %1452 = vmatpush3.msra.mxu0 %v790_v48 }
 0x3bd   :  { %1456 = vmatprep.subr.mxu0 %v1689_v1 }
 0x465   :  { %v784_v51 = vpop.f32.mrf.mxu0 }
 0x466   :  { %v785_v52 = vadd.f32 %v784_v51, %v734_v50 }
 0x467   :  { %v1427_v53 = vpop.f32.mrf.mxu0 }
 0x468   :  { %1454 = vmatmul.mubr.msk.f32.vlgmr.msra.gmra.mxu0 %vm519_vm3, %v785_v52 }
 0x469   :  { %v787_v54 = vpop.f32.mrf.mxu0  ;;  %1457 = vmatpush3.msra.mxu0 %v801_v39  ;;  %1480 = vmatprep.mubr.msk.f32.mxu0 %vm1690_vm1, %v1689_v1 }
 0x46a   :  { %1458 = vmatprep.subr.mxu0 %v1689_v1 }
 0x46b   :  { %v1428_v55 = vpop.f32.mrf.mxu0  ;;  %1459 = vmatpush3.msra.mxu0 %v800_v15 }
 0x46c   :  { %1460 = vmatprep.subr.mxu0 %v1689_v1 }
 0x46d   :  { %1461 = vmatpush3.msra.mxu0 %v799_v16 }
 0x46e   :  { %1462 = vmatprep.subr.mxu0 %v1689_v1 }
 0x46f   :  { %1463 = vmatpush3.msra.mxu0 %v798_v40 }
 0x470   :  { %1464 = vmatprep.subr.mxu0 %v1689_v1 }
 0x471   :  { %1465 = vmatpush3.msra.mxu0 %v797_v41 }
 0x472   :  { %1466 = vmatprep.subr.mxu0 %v1689_v1 }
 0x473   :  { %1467 = vmatpush3.msra.mxu0 %v796_v42  ;;  %v1169_v42 = vrot.slane %v1063_v34, %v1847_v22 }
 0x474   :  { %1468 = vmatprep.subr.mxu0 %v1689_v1 }
 0x475   :  { %1469 = vmatpush3.msra.mxu0 %v795_v43  ;;  %vm1170_vm6 = vcmp.eq.f32.partialorder %v1169_v42, %v1852_v26 }
 0x476   :  { %1470 = vmatprep.subr.mxu0 %v1689_v1 }
 0x477   :  { %1471 = vmatpush3.msra.mxu0 %v794_v44  ;;  %v1309_v44 = vsel %vm1170_vm6, 1.0, %v1689_v1 }
 0x478   :  { %1472 = vmatprep.subr.mxu0 %v1689_v1 }
 0x479   :  { %1473 = vmatpush3.msra.mxu0 %v793_v45 }
 0x47a   :  { %1474 = vmatprep.subr.mxu0 %v1689_v1 }
 0x47b   :  { %1475 = vmatpush3.msra.mxu0 %v792_v46 }
 0x47c   :  { %1476 = vmatprep.subr.mxu0 %v1689_v1 }
 0x47d   :  { %1477 = vmatpush3.msra.mxu0 %v791_v47 }
 0x47e   :  { %1478 = vmatprep.subr.mxu0 %v1689_v1 }
 0x47f   :  { %1479 = vmatpush3.msra.mxu0 %v790_v48 }
 0x480   :  { %1499 = vmatprep.subr.bf16.mxu0 %v1689_v1 }
 0x528   :  { %v871_v56 = vpop.f32.mrf.mxu0 }
 0x529   :  { %v875_v57 = vsub.f32 %v785_v52, %v871_v56 }
 0x52a   :  { %v1455_v58 = vpop.f32.mrf.mxu0 }
 0x52b   :  { %v876_v59 = vmul.f32 %v875_v57, %v875_v57 }
 0x52d   :  { %1481 = vmatmul.mubr.msk.f32.vlgmr.msra.gmra.mxu0 %vm519_vm3, %v876_v59 }
 0x52e   :  { %1511 = vmatprep.mubr.msk.bf16.mxu0 %vm1690_vm1, %v1689_v1  ;;  %1500 = vmatpush3.bf16.msra.mxu0 %v1559_v3 }
 0x52f   :  { %1501 = vmatprep.subr.bf16.mxu0 %v1689_v1 }
 0x532   :  { %1502 = vmatpush3.bf16.msra.mxu0 %v1560_v4 }
 0x533   :  { %1503 = vmatprep.subr.bf16.mxu0 %v1689_v1 }
 0x536   :  { %1504 = vmatpush3.bf16.msra.mxu0 %v1561_v5 }
 0x537   :  { %1505 = vmatprep.subr.bf16.mxu0 %v1689_v1 }
 0x53a   :  { %1506 = vmatpush3.bf16.msra.mxu0 %v1562_v6 }
 0x53b   :  { %1507 = vmatprep.subr.bf16.mxu0 %v1689_v1 }
 0x53e   :  { %1508 = vmatpush3.bf16.msra.mxu0 %v1563_v23 }
 0x53f   :  { %1509 = vmatprep.subr.bf16.mxu0 %v1689_v1 }
 0x542   :  { %1510 = vmatpush3.bf16.msra.mxu0 %v1564_v20 }
 0x5ed   :  { %v946_v7 = vpop.f32.mrf.mxu0 }
 0x5ee   :  { %v947_v8 = vadd.f32 1e-05, %v946_v7 }
 0x5ef   :  { %v1482_v9 = vpop.f32.mrf.mxu0 }
 0x5f0   :  { %1569 = vrsqrt.f32 %v947_v8 }
 0x5fd   :  { %v1570_v12 = vpop.eup %1569 }
 0x5fe   :  { %v951_v18 = vmul.f32 %v1570_v12, %v875_v57 }
 0x600   :  { %v956_v11 = vmul.f32 %v955_v10, %v951_v18 }
 0x602   :  { %v961_v19 = vadd.f32 %v960_v14, %v956_v11 }
 0x604   :  { %v962_v21 = vmax.f32 %v961_v19, 0.0 }
 0x606   :  { %v975_v13 = vpack.c.bf16 %v962_v21, %v962_v21 }
 0x608   :  { %1496 = vmatmul.mubr.msk.bf16.vlgmr.msra.gmra.mxu1 %vm519_vm3, %v975_v13 }
 0x609   :  { %1517 = vmatprep.mubr.msk.f32.mxu1 %vm1690_vm1, %v1689_v1  ;;  %1516 = vmatpush3.msk.msra.mxu1 %vm1179_vm5, %v1174_v33 }
 0x6c8   :  { %v1056_v25 = vpop.f32.mrf.mxu1 }
 0x6c9   :  { %v1057_v27 = vadd.f32 %v1293_v24, %v1056_v25 }
 0x6ca   :  { %v1497_v28 = vpop.f32.mrf.mxu1 }
 0x6cb   :  { %v1062_v29 = vmax.f32 %v1057_v27, 0.0 }
 0x6cc   :  { %v1059_v30 = vpop.f32.mrf.mxu1 }
 0x6cd   :  { %v1076_v31 = vpack.c.bf16 %v1062_v29, %v1062_v29 }
 0x6ce   :  { %v1498_v32 = vpop.f32.mrf.mxu1 }
 0x6cf   :  { %1512 = vmatmul.mubr.msk.bf16.vlgmr.msra.gmra.mxu0 %vm519_vm3, %v1076_v31 }
 0x78f   :  { %v1154_v36 = vpop.f32.mrf.mxu0 }
 0x790   :  { %v1155_v37 = vadd.f32 %v1154_v36, %v1080_v35 }
 0x791   :  { %v1513_v38 = vpop.f32.mrf.mxu0 }
 0x792   :  { %v1308_v39 = vmul.f32 -1.442695, %v1155_v37 }
 0x793   :  { %v1157_v15 = vpop.f32.mrf.mxu0 }
 0x794   :  { %1571 = vpow2.f32 %v1308_v39 }
 0x795   :  { %v1514_v16 = vpop.f32.mrf.mxu0 }
 0x7a1   :  { %v1572_v40 = vpop.eup %1571 }
 0x7a2   :  { %v1163_v41 = vadd.f32 1.0, %v1572_v40 }
 0x7a4   :  { %1573 = vrcp.f32 %v1163_v41 }
 0x7b1   :  { %v1574_v43 = vpop.eup %1573 }
 0x7b2   :  { %v1173_v45 = vmul.f32 %v1574_v43, %v1309_v44 }
 0x7b4   :  { %1518 = vmatmul.mubr.msk.f32.vlgmr.msra.gmra.mxu1 %vm1175_vm7, %v1173_v45 }
 0x874   :  { %v1249_v17 = vpop.f32.mrf.mxu1 }
 0x875   :  { %1254 = vst.msk [vmem:[%s2119_s15] sm:$0xff] %vm1253_vm8, %v1249_v17 }
 0x876   :  { %v1519_v46 = vpop.f32.mrf.mxu1 }
 0x877   :  { %1259 = vsyncpa [#allocation3], 1 }
 0x878   :  { %1260 = vsyncpa [#allocation5], 1 }
 0x879   :  { %1261 = vsyncpa [#allocation8], 1 }

</bundles_post_ra>
